<compile_context>
chip_gen: v6e
topology: v6e:2x2x1
jax: 0.10.0
libtpu: 0.0.40
codegen_flags: <defaults>
</compile_context>

<pallas_src>
import jax
import jax.numpy as jnp
from jax.experimental import pallas as pl
from jax.experimental.pallas import tpu as pltpu


def _prelu2d_kernel(x_ref, a_ref, o_ref):
    # x_ref: (rb, cb); a_ref: (1, cb) -> broadcasts over the row (sublane) axis.
    x = x_ref[...]
    a = a_ref[...]
    o_ref[...] = jnp.where(x > 0, x, a * x)


def _round_up(v, m):
    return ((v + m - 1) // m) * m


def prelu2d(x, a, *, row_block=256, target_block_bytes=2 * 1024 * 1024,
            donate_x=False):
    """x: (N, C, H, W); a: (1, C, 1, W). Returns where(x>0, x, a*x)."""
    N, C, H, W = x.shape
    assert a.shape == (1, C, 1, W), f"param shape mismatch: {a.shape}"
    M = C * H * W
    dtype_bytes = jnp.dtype(x.dtype).itemsize

    # Lane-dense flatten. Reshape of x is layout-preserving; broadcasting `a`
    # over H is a one-time, tiny materialization. Cast `a` to x.dtype so the
    # kernel math stays in the activation dtype (no implicit f32 promotion).
    x2 = x.reshape(N, M)
    a2 = jnp.broadcast_to(a.astype(x.dtype), (1, C, H, W)).reshape(1, M)

    # --- Row block ---------------------------------------------------------
    # Full-dim exception when N is small; otherwise a multiple of the sublane
    # packing (8 for 4B dtypes, 16 for 2B, 32 for 1B -- 256 covers all).
    rb = N if N <= row_block else row_block

    # --- Column block (adaptive) -------------------------------------------
    # Scale cb so rb*cb*dtype_bytes ~ target_block_bytes (amortizes the
    # ~0.35us per-grid-step overhead even when rb = N is tiny).
    cb = _round_up(max(128, target_block_bytes // max(1, rb * dtype_bytes)), 128)
    if cb >= M:
        cb = M  # single column block; full-dim exception for the lane axis
    else:
        # Nudge to an even number of column blocks (>=2) so v7x's two
        # TensorCores split the outer parallel axis evenly.
        nblk = pl.cdiv(M, cb)
        if nblk > 1 and nblk % 2 == 1:
            cb_even = _round_up(-(-M // (nblk + 1)), 128)
            if cb_even >= 128 and cb_even < M and pl.cdiv(M, cb_even) % 2 == 0:
                cb = cb_even

    # Columns outer so the `a` block index is constant over the inner row loop
    # (no per-step refetch of `a`), and the larger axis leads for megacore.
    grid = (pl.cdiv(M, cb), pl.cdiv(N, rb))

    cost = pl.CostEstimate(
        flops=3 * N * M,
        transcendentals=0,
        bytes_accessed=(2 * N * M + M) * dtype_bytes,
    )

    kwargs = {}
    if donate_x:
        kwargs["input_output_aliases"] = {0: 0}

    out2 = pl.pallas_call(
        _prelu2d_kernel,
        out_shape=jax.ShapeDtypeStruct((N, M), x.dtype),
        grid_spec=pltpu.PrefetchScalarGridSpec(
            num_scalar_prefetch=0,
            grid=grid,
            in_specs=[
                pl.BlockSpec((rb, cb), lambda ci, ri: (ri, ci)),
                pl.BlockSpec((1, cb), lambda ci, ri: (0, ci)),
            ],
            out_specs=pl.BlockSpec((rb, cb), lambda ci, ri: (ri, ci)),
        ),
        compiler_params=pltpu.CompilerParams(
            dimension_semantics=("parallel", "parallel"),
            vmem_limit_bytes=32 * 1024 * 1024,
        ),
        cost_estimate=cost,
        **kwargs,
    )(x2, a2)

    return out2.reshape(N, C, H, W)


if __name__ == "__main__":
    # Small deterministic example: x of shape (N=2, C=4, H=16, W=16).
    N, C, H, W = 2, 4, 16, 16
    key = jax.random.PRNGKey(0)
    x = jax.random.normal(key, (N, C, H, W), dtype=jnp.float32)

    # Parameter init exactly as the module's __init__: 0.25 * ones(1, C, 1, W)
    a = 0.25 * jnp.ones((1, C, 1, W), dtype=jnp.float32)

    out = prelu2d(x, a)
    out = jax.block_until_ready(out)

    # Reference check (plain JAX, same math as the PyTorch forward).
    ref = jnp.clip(x, 0.0, None) + a * jnp.clip(x, None, 0.0)
    assert out.shape == x.shape and out.dtype == x.dtype
    assert jnp.allclose(out, ref, atol=1e-6, rtol=1e-6)

    print("KERNEL_OK")
</pallas_src>

<mosaic_0001>
module attributes {stable_mosaic.version = 11 : i64} {
  func.func @_prelu2d_kernel(%arg0: i32, %arg1: i32, %arg2: memref<2x1024xf32, #tpu.memory_space<vmem>>, %arg3: memref<1x1024xf32, #tpu.memory_space<vmem>>, %arg4: memref<2x1024xf32, #tpu.memory_space<vmem>>) attributes {dimension_semantics = [#tpu.dimension_semantics<parallel>, #tpu.dimension_semantics<parallel>], iteration_bounds = array<i64: 1, 1>, scalar_prefetch = 0 : i64, scratch_operands = 0 : i64, tpu.core_type = #tpu.core_type<tc>, window_params = [{transform_indices = @transform_0, window_bounds = array<i64: 2, 1024>}, {transform_indices = @transform_1, window_bounds = array<i64: 1, 1024>}, {transform_indices = @transform_2, window_bounds = array<i64: 2, 1024>}]} {
    %c0 = arith.constant 0 : index
    %c0_0 = arith.constant 0 : index
    %0 = vector.load %arg2[%c0, %c0_0] : memref<2x1024xf32, #tpu.memory_space<vmem>>, vector<2x1024xf32>
    %c0_1 = arith.constant 0 : index
    %c0_2 = arith.constant 0 : index
    %1 = vector.load %arg3[%c0_1, %c0_2] : memref<1x1024xf32, #tpu.memory_space<vmem>>, vector<1x1024xf32>
    %cst = arith.constant 0.000000e+00 : f32
    %2 = vector.broadcast %cst : f32 to vector<2x1024xf32>
    %3 = arith.cmpf ogt, %0, %2 : vector<2x1024xf32>
    %4 = vector.broadcast %1 : vector<1x1024xf32> to vector<2x1024xf32>
    %5 = arith.mulf %4, %0 : vector<2x1024xf32>
    %6 = arith.select %3, %0, %5 : vector<2x1024xi1>, vector<2x1024xf32>
    %c0_3 = arith.constant 0 : index
    %c0_4 = arith.constant 0 : index
    %7 = vector.load %arg4[%c0_3, %c0_4] : memref<2x1024xf32, #tpu.memory_space<vmem>>, vector<2x1024xf32>
    tpu.vector_store %arg4[%c0_3, %c0_4], %6 {strides = array<i32>} : memref<2x1024xf32, #tpu.memory_space<vmem>>, vector<2x1024xf32>,
    return
  }
  func.func @transform_0(%arg0: i32, %arg1: i32) -> (i32, i32) {
    %c0_i32 = arith.constant 0 : i32
    return %arg1, %arg0 : i32, i32
  }
  func.func @transform_1(%arg0: i32, %arg1: i32) -> (i32, i32) {
    %c0_i32 = arith.constant 0 : i32
    %c0_i32_0 = arith.constant 0 : i32
    return %c0_i32, %arg0 : i32, i32
  }
  func.func @transform_2(%arg0: i32, %arg1: i32) -> (i32, i32) {
    %c0_i32 = arith.constant 0 : i32
    return %arg1, %arg0 : i32, i32
  }
}

</mosaic_0001>

<bundles_post_ra>
// kernel: tpu_custom_call.1
= control target key start
LH: loop header
LB: loop body
LE: loop exit
PB: predicated region body
PF: predicated region fallthrough
CT: control target
= control target key end

     0   :  { %7 = vsyncpa [#allocation3], 0  ;;  %s298_s0 = inlined_call_operand.hbm [shape: f32[2,1024], index: 0, kind: input, shape index: {}]   ;;  %s299_s1 = inlined_call_operand.hbm [shape: f32[1,1024], index: 1, kind: input, shape index: {}]   ;;  %s300_s2 = inlined_call_operand.hbm [shape: f32[2,1024], index: 2, kind: output, shape index: {}]  }
   0x1   :  { %8 = vsyncpa [#allocation6], 0 }
   0x2   :  { %9 = vsyncpa [#allocation4], 0  ;;  %s270_s9 = smov [#allocation2]   ;;  %s271_s11 = smov [#allocation5]  }
   0x3   :  { %s16_s10 = sshll.u32 %s270_s9, 4  ;;  %s26_s12 = sshll.u32 %s271_s11, 4  ;;  %s17_s10 = int_to_ptr.vmem [resolvable:$true] %s16_s10  ;;  %s27_s12 = int_to_ptr.vmem [resolvable:$true] %s26_s12 }
   0x4   :  { %s212_s13 = scalar_lea.vmem %s17_s10, 256  ;;  %p217_p1 = scmp.lt.s32.totalorder %s17_s10, %s17_s10 }
   0x5   :  { %p213_p0 = scmp.ne.s32.totalorder %s17_s10, %s212_s13  ;;  %p218_p2 = scmp.lt.s32.totalorder %s212_s13, %s212_s13 }
   0x7   :  { %p219_p3 = por %p218_p2, %p217_p1 }
   0x9   :  { %p220_p4 = pnand %p219_p3, %p213_p0 }
   0xb   :  { %223 = shalt.err (!%p220_p4)
}
   0xc   :  { %19 = dma.hbm_to_vmem [thread:$0]  %s298_s0, 256, %s17_s10, [#allocation3]  }
   0xd   :  { %s232_s16 = scalar_lea.vmem %s27_s12, 128  ;;  %p237_p6 = scmp.lt.s32.totalorder %s27_s12, %s27_s12 }
   0xe   :  { %p233_p5 = scmp.ne.s32.totalorder %s27_s12, %s232_s16  ;;  %p238_p7 = scmp.lt.s32.totalorder %s232_s16, %s232_s16 }
  0x10   :  { %p239_p8 = por %p238_p7, %p237_p6 }
  0x12   :  { %p240_p9 = pnand %p239_p8, %p233_p5 }
  0x14   :  { %243 = shalt.err (!%p240_p9)
}
  0x15   :  { %29 = dma.hbm_to_vmem [thread:$0]  %s299_s1, 128, %s27_s12, [#allocation6]  }
  0x16   :  { %264 = dma.done.wait [#allocation3], 256  }
  0x17   :  { %265 = vsyncadd [#allocation3], 4294967040 }
  0x18   :  { %266 = dma.done.wait [#allocation6], 128  }
  0x19   :  { %267 = vsyncadd [#allocation6], 4294967168  ;;  %v42_v0 = vlaneseq  ;;  %v272_v1 = vmov 1983009808   ;;  %v36_v12 = vld [vmem:[#allocation2] sm:$0xff]  ;;  %v38_v13 = vld [vmem:[#allocation5] sm:$0xff] }
  0x1a   :  { %v86_v2 = vunpack.c.l.s4 %v272_v1  ;;  %v37_v15 = vld [vmem:[#allocation2 + $0x8] sm:$0xff]  ;;  %v84_v20 = vcombine.high %v36_v12, %v36_v12  ;;  %vm39_vm0 = vcmp.gt.f32.partialorder %v36_v12, 0.0  ;;  %s273_s0 = smov [#allocation7]  }
  0x1b   :  { %v43_v3 = vshrl.u32 %v42_v0, 7  ;;  %v101_v28 = vcombine.high %v37_v15, %v37_v15  ;;  %s188_s1 = sshll.u32 %s273_s0, 4  ;;  %vm40_vm1 = vcmp.gt.f32.partialorder %v37_v15, 0.0  ;;  %s189_s1 = int_to_ptr.vmem [resolvable:$true] %s188_s1 }
  0x1c   :  { %v87_v4 = vunpack.c.0.s8 %v86_v2  ;;  %s244_s19 = scalar_lea.vmem %s189_s1, 256  ;;  %p249_p11 = scmp.lt.s32.totalorder %s189_s1, %s189_s1 }
  0x1d   :  { %v44_v5 = vsub.s32 0, %v43_v3  ;;  %v48_v6 = vsub.s32 1, %v43_v3  ;;  %v52_v7 = vsub.s32 2, %v43_v3  ;;  %v56_v9 = vsub.s32 3, %v43_v3  ;;  %p245_p10 = scmp.ne.s32.totalorder %s189_s1, %s244_s19  ;;  %p250_p12 = scmp.lt.s32.totalorder %s244_s19, %s244_s19 }
  0x1e   :  { %v90_v8 = vsub.s32 %v87_v4, %v43_v3  ;;  %v60_v10 = vsub.s32 4, %v43_v3  ;;  %v68_v11 = vsub.s32 6, %v43_v3  ;;  %v64_v16 = vsub.s32 5, %v43_v3 }
  0x1f   :  { %v45_v14 = vrot.slane %v38_v13, %v44_v5  ;;  %v72_v17 = vsub.s32 7, %v43_v3  ;;  %v49_v18 = vrot.slane %v38_v13, %v48_v6  ;;  %v53_v19 = vrot.slane %v38_v13, %v52_v7  ;;  %p251_p13 = por %p250_p12, %p249_p11 }
  0x20   :  { %v91_v21 = vrot.slane %v36_v12, %v90_v8  ;;  %v57_v22 = vrot.slane %v38_v13, %v56_v9  ;;  %v61_v23 = vrot.slane %v38_v13, %v60_v10  ;;  %v69_v24 = vrot.slane %v38_v13, %v68_v11 }
  0x21   :  { %v98_v25 = vrot.slane %v84_v20, %v90_v8  ;;  %v65_v29 = vrot.slane %v38_v13, %v64_v16  ;;  %v73_v30 = vrot.slane %v38_v13, %v72_v17  ;;  %v108_v31 = vrot.slane %v37_v15, %v90_v8  ;;  %p252_p0 = pnand %p251_p13, %p245_p10 }
  0x22   :  { %v99_v26 = vcombine.high %v91_v21, %v91_v21  ;;  %v126_v27 = vmul.f32 %v91_v21, %v45_v14  ;;  %v115_v35 = vrot.slane %v101_v28, %v90_v8 }
  0x23   :  { %v100_v32 = vcombine.high %v98_v25, %v98_v25  ;;  %v128_v34 = vmul.f32 %v98_v25, %v53_v19  ;;  %v116_v36 = vcombine.high %v108_v31, %v108_v31  ;;  %v130_v37 = vmul.f32 %v108_v31, %v61_v23 }
  0x24   :  { %v127_v33 = vmul.f32 %v99_v26, %v49_v18  ;;  %v117_v40 = vcombine.high %v115_v35, %v115_v35  ;;  %v132_v41 = vmul.f32 %v115_v35, %v69_v24 }
  0x25   :  { %v129_v38 = vmul.f32 %v100_v32, %v57_v22  ;;  %v131_v42 = vmul.f32 %v116_v36, %v65_v29 }
  0x26   :  { %v142_v39 = vcombine.low %v126_v27, %v127_v33  ;;  %v133_v45 = vmul.f32 %v117_v40, %v73_v30 }
  0x27   :  { %v143_v43 = vcombine.low %v128_v34, %v129_v38  ;;  %v159_v46 = vcombine.low %v130_v37, %v131_v42 }
  0x28   :  { %v150_v44 = vrot.slane %v142_v39, %v90_v8  ;;  %v160_v48 = vcombine.low %v132_v41, %v133_v45 }
  0x29   :  { %v157_v47 = vrot.slane %v143_v43, %v90_v8  ;;  %v167_v49 = vrot.slane %v159_v46, %v90_v8 }
  0x2a   :  { %v174_v51 = vrot.slane %v160_v48, %v90_v8 }
  0x2b   :  { %v158_v50 = vcombine.low %v150_v44, %v157_v47 }
  0x2c   :  { %v175_v53 = vcombine.low %v167_v49, %v174_v51 }
  0x2d   :  { %v178_v52 = vsel %vm39_vm0, %v36_v12, %v158_v50 }
  0x2e   :  { %180 = vst [vmem:[#allocation7] sm:$0xff] %v178_v52  ;;  %v179_v54 = vsel %vm40_vm1, %v37_v15, %v175_v53 }
  0x2f   :  { %181 = vst [vmem:[#allocation7 + $0x8] sm:$0xff] %v179_v54 }
  0x30   :  { %255 = shalt.err (!%p252_p0)
}
  0x31   :  { %191 = dma.vmem_to_hbm [thread:$0]  %s189_s1, 256, %s300_s2, [#allocation4]  }
  0x32   :  { %268 = dma.done.wait [#allocation4], 256  }
  0x33   :  { %269 = vsyncadd [#allocation4], 4294967040 }
  0x34   :  { %195 = vsyncpa [#allocation3], 1 }
  0x35   :  { %196 = vsyncpa [#allocation6], 1 }
  0x36   :  { %197 = vsyncpa [#allocation4], 1 }

</bundles_post_ra>
